<compile_context>
chip_gen: v6e
topology: v6e:2x2x1
jax: 0.10.0
libtpu: 0.0.40
codegen_flags: <defaults>
</compile_context>

<pallas_src>
import jax
import jax.numpy as jnp
from jax.experimental import pallas as pl
from jax.experimental.pallas import tpu as pltpu


def _actor_kernel(state_ref,
                  w1_ref, g1_ref, be1_ref,
                  g2_ref, be2_ref,
                  w3_ref, b3_ref,
                  w2_hbm,
                  out_ref,
                  w2_vmem, dma_sem):
    eps = 1e-5

    # Kick off the W2 HBM->VMEM copy immediately so it overlaps all of the
    # layer-1 matmul + BN + relu work (it is the single largest transfer).
    w2_copy = pltpu.make_async_copy(w2_hbm, w2_vmem, dma_sem)
    w2_copy.start()

    x = state_ref[...].astype(jnp.bfloat16)
    inv_b = 1.0 / x.shape[0]

    # ---- l1 (bias cancelled by BN) + bn1 (one-pass batch stats) + relu ----
    h = jnp.dot(x, w1_ref[...], preferred_element_type=jnp.float32)
    s1 = jnp.sum(h, axis=0, keepdims=True)
    s2 = jnp.sum(h * h, axis=0, keepdims=True)
    mu = s1 * inv_b
    var = jnp.maximum(s2 * inv_b - mu * mu, 0.0)       # biased variance
    scale = g1_ref[...] * jax.lax.rsqrt(var + eps)
    shift = be1_ref[...] - mu * scale
    h = jnp.maximum(h * scale + shift, 0.0)

    # ---- l2 (bias cancelled by BN) + bn2 + relu ---------------------------
    w2_copy.wait()                                      # W2 now resident in VMEM
    h = jnp.dot(h.astype(jnp.bfloat16), w2_vmem[...],
                preferred_element_type=jnp.float32)
    s1 = jnp.sum(h, axis=0, keepdims=True)
    s2 = jnp.sum(h * h, axis=0, keepdims=True)
    mu = s1 * inv_b
    var = jnp.maximum(s2 * inv_b - mu * mu, 0.0)
    scale = g2_ref[...] * jax.lax.rsqrt(var + eps)
    shift = be2_ref[...] - mu * scale
    h = jnp.maximum(h * scale + shift, 0.0)

    # ---- fused heads: z = h @ [w31|w32] + [b31|b32]  -> [B, action_dim] ---
    z = jnp.dot(h.astype(jnp.bfloat16), w3_ref[...],
                preferred_element_type=jnp.float32) + b3_ref[...]

    action_dim = out_ref.shape[1]
    half = action_dim // 2
    col = jax.lax.broadcasted_iota(jnp.int32, z.shape, 1)
    is_sm = col < half                                  # first-half lanes

    # head 1: softmax over the first-half lanes, minus 0.5
    m = jnp.max(jnp.where(is_sm, z, -jnp.inf), axis=1, keepdims=True)
    e = jnp.exp(jnp.where(is_sm, z - m, -jnp.inf))      # masked lanes -> 0
    s = jnp.sum(e, axis=1, keepdims=True)
    a1 = e * pl.reciprocal(s, approx=True) - 0.5        # EUP reciprocal

    # head 2: 0.5 * tanh on the second-half lanes
    a2 = 0.5 * jnp.tanh(z)

    # single full-width store, already in output order (no concatenate)
    out_ref[...] = jnp.where(is_sm, a1, a2)


def prepare_params(params):
    """One-time parameter prep: fuse the two head layers and cast matmul
    weights to bf16 (done once, NOT per forward call)."""
    w3 = jnp.concatenate([params["w31"], params["w32"]], axis=1)
    b3 = jnp.concatenate([params["b31"], params["b32"]], axis=1)
    return dict(
        w1=params["w1"].astype(jnp.bfloat16),
        g1=params["g1"], be1=params["be1"],
        w2=params["w2"].astype(jnp.bfloat16),
        g2=params["g2"], be2=params["be2"],
        w3=w3.astype(jnp.bfloat16), b3=b3,
    )


def actor_forward(state, prep):
    """state: [B, state_dim] f32, prep: output of prepare_params.
    Returns [B, action_dim] f32."""
    B = state.shape[0]
    hidden = prep["w2"].shape[0]
    action_dim = prep["w3"].shape[1]
    assert B > 1, "training-mode BatchNorm needs batch > 1"
    assert action_dim >= 2 and action_dim % 2 == 0, "action_dim must be even >= 2"

    vmem = pl.BlockSpec(memory_space=pltpu.MemorySpace.VMEM)
    hbm = pl.BlockSpec(memory_space=pl.ANY)   # W2 stays in HBM; DMA'd in-kernel

    args = (
        state,
        prep["w1"], prep["g1"], prep["be1"],
        prep["g2"], prep["be2"],
        prep["w3"], prep["b3"],
        prep["w2"],
    )
    return pl.pallas_call(
        _actor_kernel,
        out_shape=jax.ShapeDtypeStruct((B, action_dim), jnp.float32),
        in_specs=[vmem] * 8 + [hbm],
        out_specs=vmem,
        scratch_shapes=[
            pltpu.VMEM((hidden, hidden), jnp.bfloat16),  # W2 landing buffer
            pltpu.SemaphoreType.DMA,
        ],
    )(*args)


def init_params(key, state_dim, action_dim, hidden=256):
    """Deterministic synthetic parameters (PyTorch-equivalent shapes, pre-transposed)."""
    half = action_dim // 2
    ks = jax.random.split(key, 10)

    def lin(kw, kb, fan_in, fan_out):
        bound = 1.0 / jnp.sqrt(fan_in)
        w = jax.random.uniform(kw, (fan_in, fan_out), jnp.float32, -bound, bound)
        b = jax.random.uniform(kb, (1, fan_out), jnp.float32, -bound, bound)
        return w, b

    w1, b1 = lin(ks[0], ks[1], state_dim, hidden)
    w2, b2 = lin(ks[2], ks[3], hidden, hidden)
    w31, b31 = lin(ks[4], ks[5], hidden, half)
    w32, b32 = lin(ks[6], ks[7], hidden, half)
    # BatchNorm affine params (slightly off-default to exercise them)
    g1 = 1.0 + 0.1 * jax.random.normal(ks[8], (1, hidden), jnp.float32)
    be1 = 0.1 * jax.random.normal(ks[9], (1, hidden), jnp.float32)
    g2 = jnp.ones((1, hidden), jnp.float32)
    be2 = jnp.zeros((1, hidden), jnp.float32)
    return dict(w1=w1, b1=b1, g1=g1, be1=be1,
                w2=w2, b2=b2, g2=g2, be2=be2,
                w31=w31, b31=b31, w32=w32, b32=b32)


def actor_reference(state, params):
    """Pure-JAX f32 reference mirroring the PyTorch forward (training-mode BN).

    Keeps the l1/l2 biases and full-precision matmuls; the kernel drops the
    biases (cancelled by BN mean subtraction) and runs bf16 matmuls, so the
    comparison tolerance is ~2e-2."""
    eps = 1e-5

    def bn(h, g, be):
        mu = jnp.mean(h, axis=0, keepdims=True)
        var = jnp.mean((h - mu) ** 2, axis=0, keepdims=True)
        return (h - mu) / jnp.sqrt(var + eps) * g + be

    h = state @ params["w1"] + params["b1"]
    h = jax.nn.relu(bn(h, params["g1"], params["be1"]))
    h = h @ params["w2"] + params["b2"]
    h = jax.nn.relu(bn(h, params["g2"], params["be2"]))
    a1 = jax.nn.softmax(h @ params["w31"] + params["b31"], axis=1) - 0.5
    a2 = 0.5 * jnp.tanh(h @ params["w32"] + params["b32"])
    return jnp.concatenate([a1, a2], axis=1)


if __name__ == "__main__":
    key = jax.random.PRNGKey(0)
    k_state, k_params = jax.random.split(key)

    B, state_dim, action_dim = 8, 32, 8   # action_dim even -> two heads of 4
    # max_action is stored by the PyTorch module but unused in forward.

    state = jax.random.normal(k_state, (B, state_dim), jnp.float32)
    params = init_params(k_params, state_dim, action_dim)
    prep = prepare_params(params)          # one-time: head fusion + bf16 cast

    out = jax.block_until_ready(actor_forward(state, prep))
    ref = actor_reference(state, params)

    assert out.shape == (B, action_dim)
    max_err = float(jnp.max(jnp.abs(out - ref)))
    assert jnp.allclose(out, ref, rtol=2e-2, atol=2e-2), \
        f"mismatch vs reference, max abs err = {max_err}"

    print("KERNEL_OK")
</pallas_src>

<mosaic_0001>
module attributes {stable_mosaic.version = 11 : i64} {
  func.func @_actor_kernel(%arg0: memref<8x32xf32, #tpu.memory_space<vmem>>, %arg1: memref<32x256xbf16, #tpu.memory_space<vmem>>, %arg2: memref<1x256xf32, #tpu.memory_space<vmem>>, %arg3: memref<1x256xf32, #tpu.memory_space<vmem>>, %arg4: memref<1x256xf32, #tpu.memory_space<vmem>>, %arg5: memref<1x256xf32, #tpu.memory_space<vmem>>, %arg6: memref<256x8xbf16, #tpu.memory_space<vmem>>, %arg7: memref<1x8xf32, #tpu.memory_space<vmem>>, %arg8: memref<256x256xbf16, #tpu.memory_space<any>>, %arg9: memref<8x8xf32, #tpu.memory_space<vmem>>, %arg10: memref<256x256xbf16, #tpu.memory_space<vmem>>, %arg11: memref<!tpu.dma_semaphore, #tpu.memory_space<semaphore_mem>>) attributes {dimension_semantics = [], scalar_prefetch = 0 : i64, scratch_operands = 2 : i64, tpu.core_type = #tpu.core_type<tc>} {
    tpu.enqueue_dma source(%arg8 : memref<256x256xbf16, #tpu.memory_space<any>>) target(%arg10 : memref<256x256xbf16, #tpu.memory_space<vmem>>) target_semaphore(%arg11 : memref<!tpu.dma_semaphore, #tpu.memory_space<semaphore_mem>>)
    %c0 = arith.constant 0 : index
    %c0_0 = arith.constant 0 : index
    %0 = vector.load %arg0[%c0, %c0_0] : memref<8x32xf32, #tpu.memory_space<vmem>>, vector<8x32xf32>
    %1 = arith.truncf %0 : vector<8x32xf32> to vector<8x32xbf16>
    %c0_1 = arith.constant 0 : index
    %c0_2 = arith.constant 0 : index
    %2 = vector.load %arg1[%c0_1, %c0_2] : memref<32x256xbf16, #tpu.memory_space<vmem>>, vector<32x256xbf16>
    %cst = arith.constant dense<0.000000e+00> : vector<8x256xf32>
    %3 = tpu.matmul %1, %2, %cst {dimension_numbers = #tpu.dot_dimension_numbers<[1], [0], [0], [1], [0, 0, 1, 1], [], []>} : vector<8x32xbf16>, vector<32x256xbf16>, vector<8x256xf32> -> vector<8x256xf32>
    %cst_3 = arith.constant dense<0.000000e+00> : vector<256xf32>
    %4 = vector.multi_reduction <add>, %3, %cst_3 [0] : vector<8x256xf32> to vector<256xf32>
    %5 = vector.shape_cast %4 : vector<256xf32> to vector<1x256xf32>
    %6 = arith.mulf %3, %3 : vector<8x256xf32>
    %cst_4 = arith.constant dense<0.000000e+00> : vector<256xf32>
    %7 = vector.multi_reduction <add>, %6, %cst_4 [0] : vector<8x256xf32> to vector<256xf32>
    %8 = vector.shape_cast %7 : vector<256xf32> to vector<1x256xf32>
    %cst_5 = arith.constant 1.250000e-01 : f32
    %9 = vector.broadcast %cst_5 : f32 to vector<1x256xf32>
    %10 = arith.mulf %5, %9 : vector<1x256xf32>
    %cst_6 = arith.constant 1.250000e-01 : f32
    %11 = vector.broadcast %cst_6 : f32 to vector<1x256xf32>
    %12 = arith.mulf %8, %11 : vector<1x256xf32>
    %13 = arith.mulf %10, %10 : vector<1x256xf32>
    %14 = arith.subf %12, %13 : vector<1x256xf32>
    %cst_7 = arith.constant 0.000000e+00 : f32
    %15 = vector.broadcast %cst_7 : f32 to vector<1x256xf32>
    %16 = arith.maximumf %14, %15 : vector<1x256xf32>
    %c0_8 = arith.constant 0 : index
    %c0_9 = arith.constant 0 : index
    %17 = vector.load %arg2[%c0_8, %c0_9] : memref<1x256xf32, #tpu.memory_space<vmem>>, vector<1x256xf32>
    %cst_10 = arith.constant 9.99999974E-6 : f32
    %18 = vector.broadcast %cst_10 : f32 to vector<1x256xf32>
    %19 = arith.addf %16, %18 : vector<1x256xf32>
    %20 = math.rsqrt %19 : vector<1x256xf32>
    %21 = arith.mulf %17, %20 : vector<1x256xf32>
    %c0_11 = arith.constant 0 : index
    %c0_12 = arith.constant 0 : index
    %22 = vector.load %arg3[%c0_11, %c0_12] : memref<1x256xf32, #tpu.memory_space<vmem>>, vector<1x256xf32>
    %23 = arith.mulf %10, %21 : vector<1x256xf32>
    %24 = arith.subf %22, %23 : vector<1x256xf32>
    %25 = vector.broadcast %21 : vector<1x256xf32> to vector<8x256xf32>
    %26 = arith.mulf %3, %25 : vector<8x256xf32>
    %27 = vector.broadcast %24 : vector<1x256xf32> to vector<8x256xf32>
    %28 = arith.addf %26, %27 : vector<8x256xf32>
    %cst_13 = arith.constant 0.000000e+00 : f32
    %29 = vector.broadcast %cst_13 : f32 to vector<8x256xf32>
    %30 = arith.maximumf %28, %29 : vector<8x256xf32>
    tpu.wait_dma2 semaphore(%arg11 : memref<!tpu.dma_semaphore, #tpu.memory_space<semaphore_mem>>) src(%arg8 : memref<256x256xbf16, #tpu.memory_space<any>>) dst(%arg10 : memref<256x256xbf16, #tpu.memory_space<vmem>>)
    %31 = arith.truncf %30 : vector<8x256xf32> to vector<8x256xbf16>
    %c0_14 = arith.constant 0 : index
    %c0_15 = arith.constant 0 : index
    %32 = vector.load %arg10[%c0_14, %c0_15] : memref<256x256xbf16, #tpu.memory_space<vmem>>, vector<256x256xbf16>
    %cst_16 = arith.constant dense<0.000000e+00> : vector<8x256xf32>
    %33 = tpu.matmul %31, %32, %cst_16 {dimension_numbers = #tpu.dot_dimension_numbers<[1], [0], [0], [1], [0, 0, 1, 1], [], []>} : vector<8x256xbf16>, vector<256x256xbf16>, vector<8x256xf32> -> vector<8x256xf32>
    %cst_17 = arith.constant dense<0.000000e+00> : vector<256xf32>
    %34 = vector.multi_reduction <add>, %33, %cst_17 [0] : vector<8x256xf32> to vector<256xf32>
    %35 = vector.shape_cast %34 : vector<256xf32> to vector<1x256xf32>
    %36 = arith.mulf %33, %33 : vector<8x256xf32>
    %cst_18 = arith.constant dense<0.000000e+00> : vector<256xf32>
    %37 = vector.multi_reduction <add>, %36, %cst_18 [0] : vector<8x256xf32> to vector<256xf32>
    %38 = vector.shape_cast %37 : vector<256xf32> to vector<1x256xf32>
    %cst_19 = arith.constant 1.250000e-01 : f32
    %39 = vector.broadcast %cst_19 : f32 to vector<1x256xf32>
    %40 = arith.mulf %35, %39 : vector<1x256xf32>
    %cst_20 = arith.constant 1.250000e-01 : f32
    %41 = vector.broadcast %cst_20 : f32 to vector<1x256xf32>
    %42 = arith.mulf %38, %41 : vector<1x256xf32>
    %43 = arith.mulf %40, %40 : vector<1x256xf32>
    %44 = arith.subf %42, %43 : vector<1x256xf32>
    %cst_21 = arith.constant 0.000000e+00 : f32
    %45 = vector.broadcast %cst_21 : f32 to vector<1x256xf32>
    %46 = arith.maximumf %44, %45 : vector<1x256xf32>
    %c0_22 = arith.constant 0 : index
    %c0_23 = arith.constant 0 : index
    %47 = vector.load %arg4[%c0_22, %c0_23] : memref<1x256xf32, #tpu.memory_space<vmem>>, vector<1x256xf32>
    %cst_24 = arith.constant 9.99999974E-6 : f32
    %48 = vector.broadcast %cst_24 : f32 to vector<1x256xf32>
    %49 = arith.addf %46, %48 : vector<1x256xf32>
    %50 = math.rsqrt %49 : vector<1x256xf32>
    %51 = arith.mulf %47, %50 : vector<1x256xf32>
    %c0_25 = arith.constant 0 : index
    %c0_26 = arith.constant 0 : index
    %52 = vector.load %arg5[%c0_25, %c0_26] : memref<1x256xf32, #tpu.memory_space<vmem>>, vector<1x256xf32>
    %53 = arith.mulf %40, %51 : vector<1x256xf32>
    %54 = arith.subf %52, %53 : vector<1x256xf32>
    %55 = vector.broadcast %51 : vector<1x256xf32> to vector<8x256xf32>
    %56 = arith.mulf %33, %55 : vector<8x256xf32>
    %57 = vector.broadcast %54 : vector<1x256xf32> to vector<8x256xf32>
    %58 = arith.addf %56, %57 : vector<8x256xf32>
    %cst_27 = arith.constant 0.000000e+00 : f32
    %59 = vector.broadcast %cst_27 : f32 to vector<8x256xf32>
    %60 = arith.maximumf %58, %59 : vector<8x256xf32>
    %61 = arith.truncf %60 : vector<8x256xf32> to vector<8x256xbf16>
    %c0_28 = arith.constant 0 : index
    %c0_29 = arith.constant 0 : index
    %62 = vector.load %arg6[%c0_28, %c0_29] : memref<256x8xbf16, #tpu.memory_space<vmem>>, vector<256x8xbf16>
    %cst_30 = arith.constant dense<0.000000e+00> : vector<8x8xf32>
    %63 = tpu.matmul %61, %62, %cst_30 {dimension_numbers = #tpu.dot_dimension_numbers<[1], [0], [0], [1], [0, 0, 1, 1], [], []>} : vector<8x256xbf16>, vector<256x8xbf16>, vector<8x8xf32> -> vector<8x8xf32>
    %c0_31 = arith.constant 0 : index
    %c0_32 = arith.constant 0 : index
    %64 = vector.load %arg7[%c0_31, %c0_32] : memref<1x8xf32, #tpu.memory_space<vmem>>, vector<1x8xf32>
    %65 = vector.broadcast %64 : vector<1x8xf32> to vector<8x8xf32>
    %66 = arith.addf %63, %65 : vector<8x8xf32>
    %67 = tpu.iota {dimensions = array<i32: 1>} : vector<8x8xi32>
    %c4_i32 = arith.constant 4 : i32
    %68 = vector.broadcast %c4_i32 : i32 to vector<8x8xi32>
    %69 = arith.cmpi slt, %67, %68 : vector<8x8xi32>
    %cst_33 = arith.constant 0xFF800000 : f32
    %70 = vector.broadcast %cst_33 : f32 to vector<8x8xf32>
    %71 = arith.select %69, %66, %70 : vector<8x8xi1>, vector<8x8xf32>
    %cst_34 = arith.constant dense<0xFF800000> : vector<8xf32>
    %72 = vector.multi_reduction <maximumf>, %71, %cst_34 [1] : vector<8x8xf32> to vector<8xf32>
    %73 = vector.shape_cast %72 : vector<8xf32> to vector<8x1xf32>
    %74 = vector.broadcast %73 : vector<8x1xf32> to vector<8x8xf32>
    %75 = arith.subf %66, %74 : vector<8x8xf32>
    %cst_35 = arith.constant 0xFF800000 : f32
    %76 = vector.broadcast %cst_35 : f32 to vector<8x8xf32>
    %77 = arith.select %69, %75, %76 : vector<8x8xi1>, vector<8x8xf32>
    %78 = math.exp %77 : vector<8x8xf32>
    %cst_36 = arith.constant dense<0.000000e+00> : vector<8xf32>
    %79 = vector.multi_reduction <add>, %78, %cst_36 [1] : vector<8x8xf32> to vector<8xf32>
    %80 = vector.shape_cast %79 : vector<8xf32> to vector<8x1xf32>
    %81 = tpu.reciprocal %80 {approx = true} : vector<8x1xf32> -> vector<8x1xf32>
    %82 = vector.broadcast %81 : vector<8x1xf32> to vector<8x8xf32>
    %83 = arith.mulf %78, %82 : vector<8x8xf32>
    %cst_37 = arith.constant 5.000000e-01 : f32
    %84 = vector.broadcast %cst_37 : f32 to vector<8x8xf32>
    %85 = arith.subf %83, %84 : vector<8x8xf32>
    %86 = math.tanh %66 : vector<8x8xf32>
    %cst_38 = arith.constant 5.000000e-01 : f32
    %87 = vector.broadcast %cst_38 : f32 to vector<8x8xf32>
    %88 = arith.mulf %87, %86 : vector<8x8xf32>
    %89 = arith.select %69, %85, %88 : vector<8x8xi1>, vector<8x8xf32>
    %c0_39 = arith.constant 0 : index
    %c0_40 = arith.constant 0 : index
    %90 = vector.load %arg9[%c0_39, %c0_40] : memref<8x8xf32, #tpu.memory_space<vmem>>, vector<8x8xf32>
    tpu.vector_store %arg9[%c0_39, %c0_40], %89 {strides = array<i32>} : memref<8x8xf32, #tpu.memory_space<vmem>>, vector<8x8xf32>,
    return
  }
}

</mosaic_0001>

<bundles_post_ra>
// kernel: tpu_custom_call.1
= control target key start
LH: loop header
LB: loop body
LE: loop exit
PB: predicated region body
PF: predicated region fallthrough
CT: control target
= control target key end

     0   :  { %v1002_v2 = vmov 0   ;;  %s1190_s0 = inlined_call_operand.vmem [shape: f32[8,32], index: 0, kind: input, shape index: {}]   ;;  %s1191_s1 = inlined_call_operand.vmem [shape: bf16[32,256], index: 1, kind: input, shape index: {}]   ;;  %s1192_s2 = inlined_call_operand.vmem [shape: f32[1,256], index: 2, kind: input, shape index: {}]   ;;  %s1193_s3 = inlined_call_operand.vmem [shape: f32[1,256], index: 3, kind: input, shape index: {}]   ;;  %s1194_s4 = inlined_call_operand.vmem [shape: f32[1,256], index: 4, kind: input, shape index: {}]   ;;  %s1195_s5 = inlined_call_operand.vmem [shape: f32[1,256], index: 5, kind: input, shape index: {}]   ;;  %s1196_s6 = inlined_call_operand.vmem [shape: bf16[256,8], index: 6, kind: input, shape index: {}]   ;;  %s1197_s7 = inlined_call_operand.vmem [shape: f32[1,8], index: 7, kind: input, shape index: {}]   ;;  %s1198_s8 = inlined_call_operand.hbm [shape: bf16[256,256], index: 8, kind: input, shape index: {}]   ;;  %s1199_s9 = inlined_call_operand.hbm [shape: f32[8,8], index: 9, kind: output, shape index: {}]  }
   0x1   :  { %v874_v0 = vld [vmem:[%s1191_s1 + $0x14] ss:$8 sps:$4 sm:$0xff]   ;;  %v876_v1 = vld [vmem:[%s1191_s1 + $0x10] ss:$8 sps:$4 sm:$0xff]   ;;  %105 = vmatprep.mubr.bf16.mxu0 %v1002_v2  ;;  %v877_v3 = vld [vmem:[%s1191_s1 + $0x4] ss:$8 sps:$4 sm:$0xff]  }
   0x2   :  { %85 = vmatprep.subr.bf16.mxu0 %v874_v0  ;;  %v879_v4 = vld [vmem:[%s1191_s1] ss:$8 sps:$4 sm:$0xff]  }
   0x3   :  { %86 = vmatpush1.bf16.msra.mxu0 %v876_v1  ;;  %v43_v5 = vld [vmem:[%s1190_s0] sm:$0xff] }
   0x4   :  { %14 = vsyncpa [#allocation5], 0  ;;  %87 = vmatprep.subr.bf16.mxu0 %v877_v3  ;;  %v44_v6 = vpack.c.bf16 %v43_v5, %v43_v5  ;;  %vm69_vm0 = vcmask 261120   ;;  %s1003_s19 = smov [#allocation2]  }
   0x5   :  { %s39_s20 = sshll.u32 %s1003_s19, 4  ;;  %s40_s20 = int_to_ptr.vmem [resolvable:$true] %s39_s20 }
   0x6   :  { %s966_s21 = scalar_lea.vmem %s40_s20, 4096  ;;  %p971_p1 = scmp.lt.s32.totalorder %s40_s20, %s40_s20 }
   0x7   :  { %88 = vmatpush1.bf16.msra.mxu0 %v879_v4  ;;  %p967_p0 = scmp.ne.s32.totalorder %s40_s20, %s966_s21  ;;  %p972_p2 = scmp.lt.s32.totalorder %s966_s21, %s966_s21 }
   0x9   :  { %p973_p3 = por %p972_p2, %p971_p1 }
   0xa   :  { %796 = vmatmul.mubr.msk.bf16.vlgmr.msra.gmra.mxu0 %vm69_vm0, %v44_v6 }
   0xb   :  { %p974_p4 = pnand %p973_p3, %p967_p0 }
   0xd   :  { %977 = shalt.err (!%p974_p4)  }
   0xe   :  { %42 = dma.hbm_to_vmem [thread:$0]  %s1198_s8, 4096, %s40_s20, [#allocation3]  ;;  %v1004_v49 = vmov 1966171168   ;;  %v161_v51 = vlaneseq  ;;  %v150_v59 = vld [vmem:[%s1192_s2] sm:$0x3] }
   0xf   :  { %v159_v50 = vunpack.c.l.s4 %v1004_v49  ;;  %v174_v6 = vld [vmem:[%s1193_s3] sm:$0x3] }
  0x10   :  { %v162_v53 = vshrl.u32 %v161_v51, 7 }
  0x11   :  { %v160_v52 = vunpack.c.0.s8 %v159_v50 }
  0x12   :  { %v1094_v61 = vsub.s32 0, %v162_v53  ;;  %v1096_v62 = vsub.s32 1, %v162_v53 }
  0x13   :  { %v1087_v55 = vsub.s32 %v160_v52, %v162_v53 }
  0xca   :  { %v1074_v7 = vpop.f32.mrf.mxu0 }
  0xcb   :  { %v114_v8 = vrot.slane %v1074_v7, 4  ;;  %v126_v9 = vmul.f32 %v1074_v7, %v1074_v7 }
  0xcc   :  { %v1079_v10 = vpop.f32.mrf.mxu0 }
  0xcd   :  { %v115_v11 = vadd.f32 %v114_v8, %v1074_v7  ;;  %v128_v12 = vrot.slane %v126_v9, 4  ;;  %v120_v13 = vrot.slane %v1079_v10, 4  ;;  %v127_v14 = vmul.f32 %v1079_v10, %v1079_v10 }
  0xce   :  { %v111_v15 = vpop.f32.mrf.mxu0 }
  0xcf   :  { %v116_v16 = vrot.slane %v115_v11, 2  ;;  %v129_v17 = vadd.f32 %v128_v12, %v126_v9  ;;  %v121_v18 = vadd.f32 %v120_v13, %v1079_v10  ;;  %v134_v19 = vrot.slane %v127_v14, 4 }
  0xd0   :  { %v112_v20 = vpop.f32.mrf.mxu0 }
  0xd1   :  { %v117_v21 = vadd.f32 %v116_v16, %v115_v11  ;;  %v130_v22 = vrot.slane %v129_v17, 2  ;;  %v122_v23 = vrot.slane %v121_v18, 2  ;;  %v135_v24 = vadd.f32 %v134_v19, %v127_v14 }
  0xd3   :  { %v118_v25 = vrot.slane %v117_v21, 1  ;;  %v131_v26 = vadd.f32 %v130_v22, %v129_v17  ;;  %v123_v27 = vadd.f32 %v122_v23, %v121_v18  ;;  %v136_v28 = vrot.slane %v135_v24, 2 }
  0xd5   :  { %v119_v29 = vadd.f32 %v118_v25, %v117_v21  ;;  %v132_v30 = vrot.slane %v131_v26, 1  ;;  %v124_v31 = vrot.slane %v123_v27, 1  ;;  %v137_v32 = vadd.f32 %v136_v28, %v135_v24 }
  0xd7   :  { %v133_v33 = vadd.f32 %v132_v30, %v131_v26  ;;  %v140_v34 = vmul.f32 0.125, %v119_v29  ;;  %v125_v35 = vadd.f32 %v124_v31, %v123_v27  ;;  %v138_v36 = vrot.slane %v137_v32, 1 }
  0xd9   :  { %v142_v37 = vmul.f32 0.125, %v133_v33  ;;  %v144_v38 = vmul.f32 %v140_v34, %v140_v34  ;;  %v139_v39 = vadd.f32 %v138_v36, %v137_v32  ;;  %v141_v40 = vmul.f32 0.125, %v125_v35 }
  0xdb   :  { %v146_v41 = vsub.f32 %v142_v37, %v144_v38  ;;  %v143_v42 = vmul.f32 0.125, %v139_v39  ;;  %v145_v43 = vmul.f32 %v141_v40, %v141_v40 }
  0xdd   :  { %v148_v44 = vmax.f32 %v146_v41, 0.0  ;;  %v147_v45 = vsub.f32 %v143_v42, %v145_v43 }
  0xdf   :  { %v151_v46 = vadd.f32 1e-05, %v148_v44  ;;  %v149_v47 = vmax.f32 %v147_v45, 0.0 }
  0xe1   :  { %v152_v48 = vadd.f32 1e-05, %v149_v47  ;;  %880 = vrsqrt.f32 %v151_v46 }
  0xe3   :  { %882 = vrsqrt.f32 %v152_v48 }
  0xee   :  { %v881_v54 = vpop.eup %880 }
  0xf0   :  { %v883_v56 = vpop.eup %882 }
  0xf1   :  { %v157_v57 = vcombine.low %v881_v54, %v883_v56 }
  0xf3   :  { %v164_v58 = vrot.slane %v157_v57, %v1087_v55 }
  0xf5   :  { %v171_v60 = vrot.slane %v164_v58, %v1087_v55 }
  0xf7   :  { %v173_v63 = vmul.f32 %v171_v60, %v150_v59 }
  0xf9   :  { %v179_v0 = vrot.slane %v173_v63, %v1094_v61  ;;  %v183_v1 = vrot.slane %v173_v63, %v1096_v62 }
  0xfb   :  { %v186_v2 = vmul.f32 %v179_v0, %v140_v34  ;;  %v187_v3 = vmul.f32 %v183_v1, %v141_v40  ;;  %v207_v11 = vmul.f32 %v179_v0, %v1074_v7  ;;  %v208_v12 = vmul.f32 %v183_v1, %v1079_v10 }
  0xfd   :  { %v190_v4 = vcombine.low %v186_v2, %v187_v3 }
  0xff   :  { %v197_v5 = vrot.slane %v190_v4, %v1087_v55 }
 0x101   :  { %v204_v8 = vrot.slane %v197_v5, %v1087_v55 }
 0x103   :  { %v206_v9 = vsub.f32 %v174_v6, %v204_v8 }
 0x105   :  { %v213_v13 = vrot.slane %v206_v9, %v1094_v61  ;;  %v217_v14 = vrot.slane %v206_v9, %v1096_v62 }
 0x107   :  { %v1109_v15 = vadd.f32 %v213_v13, %v207_v11  ;;  %v221_v16 = vadd.f32 %v217_v14, %v208_v12 }
 0x109   :  { %v222_v17 = vmax.f32 %v1109_v15, 0.0  ;;  %v223_v18 = vmax.f32 %v221_v16, 0.0 }
 0x10a   :  { %998 = dma.done.wait [#allocation3], 4096 }
 0x10b   :  { %999 = vsyncadd [#allocation3], 4294963200  ;;  %v229_v19 = vpack.c.bf16 %v223_v18, %v223_v18  ;;  %v884_v20 = vld [vmem:[#allocation2 + $0x74] ss:$8 sps:$4 sm:$0xff]   ;;  %v886_v21 = vld [vmem:[#allocation2 + $0x70] ss:$8 sps:$4 sm:$0xff]   ;;  %v228_v50 = vpack.c.bf16 %v222_v17, %v222_v17 }
 0x10c   :  { %422 = vmatprep.subr.bf16.mxu1 %v884_v20  ;;  %v887_v7 = vld [vmem:[#allocation2 + $0x64] ss:$8 sps:$4 sm:$0xff]   ;;  %v889_v10 = vld [vmem:[#allocation2 + $0x60] ss:$8 sps:$4 sm:$0xff]   ;;  %v890_v22 = vld [vmem:[#allocation2 + $0x54] ss:$8 sps:$4 sm:$0xff]  }
 0x10d   :  { %454 = vmatprep.mubr.bf16.mxu1 %v229_v19  ;;  %423 = vmatpush1.bf16.msra.mxu1 %v886_v21  ;;  %v892_v23 = vld [vmem:[#allocation2 + $0x50] ss:$8 sps:$4 sm:$0xff]   ;;  %v893_v24 = vld [vmem:[#allocation2 + $0x44] ss:$8 sps:$4 sm:$0xff]   ;;  %v895_v25 = vld [vmem:[#allocation2 + $0x40] ss:$8 sps:$4 sm:$0xff]  }
 0x10e   :  { %424 = vmatprep.subr.bf16.mxu1 %v887_v7  ;;  %v896_v26 = vld [vmem:[#allocation2 + $0x34] ss:$8 sps:$4 sm:$0xff]   ;;  %v898_v27 = vld [vmem:[#allocation2 + $0x30] ss:$8 sps:$4 sm:$0xff]   ;;  %v899_v28 = vld [vmem:[#allocation2 + $0x24] ss:$8 sps:$4 sm:$0xff]  }
 0x10f   :  { %v901_v29 = vld [vmem:[#allocation2 + $0x20] ss:$8 sps:$4 sm:$0xff]   ;;  %v902_v30 = vld [vmem:[#allocation2 + $0x14] ss:$8 sps:$4 sm:$0xff]   ;;  %v904_v31 = vld [vmem:[#allocation2 + $0x10] ss:$8 sps:$4 sm:$0xff]  }
 0x110   :  { %v905_v32 = vld [vmem:[#allocation2 + $0x4] ss:$8 sps:$4 sm:$0xff]   ;;  %v907_v33 = vld [vmem:[#allocation2] ss:$8 sps:$4 sm:$0xff]   ;;  %v908_v34 = vld [vmem:[#allocation2 + $0xf4] ss:$8 sps:$4 sm:$0xff]  }
 0x111   :  { %425 = vmatpush1.bf16.msra.mxu1 %v889_v10  ;;  %v910_v35 = vld [vmem:[#allocation2 + $0xf0] ss:$8 sps:$4 sm:$0xff]   ;;  %v911_v36 = vld [vmem:[#allocation2 + $0xe4] ss:$8 sps:$4 sm:$0xff]   ;;  %v913_v37 = vld [vmem:[#allocation2 + $0xe0] ss:$8 sps:$4 sm:$0xff]  }
 0x112   :  { %426 = vmatprep.subr.bf16.mxu1 %v890_v22  ;;  %v914_v38 = vld [vmem:[#allocation2 + $0xd4] ss:$8 sps:$4 sm:$0xff]   ;;  %v916_v39 = vld [vmem:[#allocation2 + $0xd0] ss:$8 sps:$4 sm:$0xff]   ;;  %v917_v40 = vld [vmem:[#allocation2 + $0xc4] ss:$8 sps:$4 sm:$0xff]  }
 0x113   :  { %v919_v41 = vld [vmem:[#allocation2 + $0xc0] ss:$8 sps:$4 sm:$0xff]   ;;  %v920_v42 = vld [vmem:[#allocation2 + $0xb4] ss:$8 sps:$4 sm:$0xff]   ;;  %v922_v43 = vld [vmem:[#allocation2 + $0xb0] ss:$8 sps:$4 sm:$0xff]  }
 0x114   :  { %v923_v44 = vld [vmem:[#allocation2 + $0xa4] ss:$8 sps:$4 sm:$0xff]   ;;  %v925_v45 = vld [vmem:[#allocation2 + $0xa0] ss:$8 sps:$4 sm:$0xff]   ;;  %v926_v46 = vld [vmem:[#allocation2 + $0x94] ss:$8 sps:$4 sm:$0xff]  }
 0x115   :  { %427 = vmatpush1.bf16.msra.mxu1 %v892_v23  ;;  %v928_v47 = vld [vmem:[#allocation2 + $0x90] ss:$8 sps:$4 sm:$0xff]   ;;  %v929_v48 = vld [vmem:[#allocation2 + $0x84] ss:$8 sps:$4 sm:$0xff]   ;;  %v931_v49 = vld [vmem:[#allocation2 + $0x80] ss:$8 sps:$4 sm:$0xff]  }
 0x116   :  { %428 = vmatprep.subr.bf16.mxu1 %v893_v24  ;;  %v932_v52 = vld [vmem:[%s1196_s6 + $0x78] sm:$0xff]   ;;  %v934_v54 = vld [vmem:[%s1196_s6 + $0x70] sm:$0xff]   ;;  %v936_v57 = vld [vmem:[%s1196_s6 + $0x68] sm:$0xff]   ;;  %vm754_vm2 = vcmask 64512  }
 0x117   :  { %v933_v53 = vld [vmem:[%s1196_s6 + $0x38] sm:$0xff]   ;;  %848 = vmatprep.subr.bf16.mxu0 %v932_v52  ;;  %v935_v56 = vld [vmem:[%s1196_s6 + $0x30] sm:$0xff]   ;;  %v937_v58 = vld [vmem:[%s1196_s6 + $0x28] sm:$0xff]  }
 0x118   :  { %849 = vmatpush3.bf16.msra.mxu0 %v933_v53  ;;  %v938_v59 = vld [vmem:[%s1196_s6 + $0x60] sm:$0xff]   ;;  %v940_v63 = vld [vmem:[%s1196_s6 + $0x58] sm:$0xff]   ;;  %v942_v1 = vld [vmem:[%s1196_s6 + $0x50] sm:$0xff]  }
 0x119   :  { %429 = vmatpush1.bf16.msra.mxu1 %v895_v25  ;;  %850 = vmatprep.subr.bf16.mxu0 %v934_v54  ;;  %v939_v60 = vld [vmem:[%s1196_s6 + $0x20] sm:$0xff]   ;;  %v941_v0 = vld [vmem:[%s1196_s6 + $0x18] sm:$0xff]   ;;  %v943_v2 = vld [vmem:[%s1196_s6 + $0x10] sm:$0xff]  }
 0x11a   :  { %430 = vmatprep.subr.bf16.mxu1 %v896_v26  ;;  %v944_v3 = vld [vmem:[%s1196_s6 + $0x48] sm:$0xff]   ;;  %v946_v5 = vld [vmem:[%s1196_s6 + $0x40] sm:$0xff]  }
 0x11b   :  { %v945_v4 = vld [vmem:[%s1196_s6 + $0x8] sm:$0xff]   ;;  %v947_v6 = vld [vmem:[%s1196_s6] sm:$0xff]  }
 0x11c   :  { %851 = vmatpush3.bf16.msra.mxu0 %v935_v56  ;;  %v499_v54 = vld [vmem:[%s1194_s4] sm:$0x3] }
 0x11d   :  { %431 = vmatpush1.bf16.msra.mxu1 %v898_v27  ;;  %852 = vmatprep.subr.bf16.mxu0 %v936_v57 }
 0x11e   :  { %432 = vmatprep.subr.bf16.mxu1 %v899_v28 }
 0x120   :  { %853 = vmatpush3.bf16.msra.mxu0 %v937_v58 }
 0x121   :  { %433 = vmatpush1.bf16.msra.mxu1 %v901_v29  ;;  %854 = vmatprep.subr.bf16.mxu0 %v938_v59 }
 0x122   :  { %434 = vmatprep.subr.bf16.mxu1 %v902_v30 }
 0x124   :  { %855 = vmatpush3.bf16.msra.mxu0 %v939_v60 }
 0x125   :  { %435 = vmatpush1.bf16.msra.mxu1 %v904_v31  ;;  %856 = vmatprep.subr.bf16.mxu0 %v940_v63 }
 0x126   :  { %436 = vmatprep.subr.bf16.mxu1 %v905_v32 }
 0x128   :  { %857 = vmatpush3.bf16.msra.mxu0 %v941_v0 }
 0x129   :  { %437 = vmatpush1.bf16.msra.mxu1 %v907_v33  ;;  %858 = vmatprep.subr.bf16.mxu0 %v942_v1 }
 0x12a   :  { %438 = vmatprep.subr.bf16.mxu1 %v908_v34 }
 0x12c   :  { %859 = vmatpush3.bf16.msra.mxu0 %v943_v2  ;;  %v523_v2 = vld [vmem:[%s1195_s5] sm:$0x3] }
 0x12d   :  { %439 = vmatpush2.bf16.msra.mxu1 %v910_v35  ;;  %860 = vmatprep.subr.bf16.mxu0 %v944_v3 }
 0x12e   :  { %440 = vmatprep.subr.bf16.mxu1 %v911_v36 }
 0x130   :  { %861 = vmatpush3.bf16.msra.mxu0 %v945_v4 }
 0x131   :  { %441 = vmatpush2.bf16.msra.mxu1 %v913_v37  ;;  %862 = vmatprep.subr.bf16.mxu0 %v946_v5 }
 0x132   :  { %442 = vmatprep.subr.bf16.mxu1 %v914_v38 }
 0x134   :  { %863 = vmatpush3.bf16.msra.mxu0 %v947_v6 }
 0x135   :  { %443 = vmatpush2.bf16.msra.mxu1 %v916_v39 }
 0x136   :  { %444 = vmatprep.subr.bf16.mxu1 %v917_v40 }
 0x139   :  { %445 = vmatpush2.bf16.msra.mxu1 %v919_v41 }
 0x13a   :  { %446 = vmatprep.subr.bf16.mxu1 %v920_v42 }
 0x13d   :  { %447 = vmatpush2.bf16.msra.mxu1 %v922_v43 }
 0x13e   :  { %448 = vmatprep.subr.bf16.mxu1 %v923_v44 }
 0x141   :  { %449 = vmatpush2.bf16.msra.mxu1 %v925_v45 }
 0x142   :  { %450 = vmatprep.subr.bf16.mxu1 %v926_v46 }
 0x145   :  { %451 = vmatpush2.bf16.msra.mxu1 %v928_v47 }
 0x146   :  { %452 = vmatprep.subr.bf16.mxu1 %v929_v48 }
 0x149   :  { %453 = vmatpush2.bf16.msra.mxu1 %v931_v49 }
 0x14c   :  { %455 = vmatmul.mubr.bf16.vlgmr.msra.gmra.mxu1 %v228_v50 }
 0x20c   :  { %v456_v8 = vpop.f32.mrf.mxu1 }
 0x20d   :  { %v463_v9 = vrot.slane %v456_v8, 4  ;;  %v475_v11 = vmul.f32 %v456_v8, %v456_v8 }
 0x20e   :  { %v458_v12 = vpop.f32.mrf.mxu1 }
 0x20f   :  { %v464_v13 = vadd.f32 %v463_v9, %v456_v8  ;;  %v477_v14 = vrot.slane %v475_v11, 4  ;;  %v469_v15 = vrot.slane %v458_v12, 4  ;;  %v476_v16 = vmul.f32 %v458_v12, %v458_v12 }
 0x210   :  { %v460_v17 = vpop.f32.mrf.mxu1 }
 0x211   :  { %v465_v18 = vrot.slane %v464_v13, 2  ;;  %v478_v19 = vadd.f32 %v477_v14, %v475_v11  ;;  %v470_v20 = vadd.f32 %v469_v15, %v458_v12  ;;  %v483_v21 = vrot.slane %v476_v16, 4 }
 0x212   :  { %v461_v7 = vpop.f32.mrf.mxu1 }
 0x213   :  { %v466_v10 = vadd.f32 %v465_v18, %v464_v13  ;;  %v479_v22 = vrot.slane %v478_v19, 2  ;;  %v471_v23 = vrot.slane %v470_v20, 2  ;;  %v484_v24 = vadd.f32 %v483_v21, %v476_v16 }
 0x215   :  { %v467_v25 = vrot.slane %v466_v10, 1  ;;  %v480_v26 = vadd.f32 %v479_v22, %v478_v19  ;;  %v472_v27 = vadd.f32 %v471_v23, %v470_v20  ;;  %v485_v28 = vrot.slane %v484_v24, 2 }
 0x216   :  { %v751_v20 = vand.u32 127, %v161_v51 }
 0x217   :  { %v468_v29 = vadd.f32 %v467_v25, %v466_v10  ;;  %v481_v30 = vrot.slane %v480_v26, 1  ;;  %v473_v31 = vrot.slane %v472_v27, 1  ;;  %v486_v32 = vadd.f32 %v485_v28, %v484_v24 }
 0x218   :  { %vm752_vm1 = vcmp.lt.s32.totalorder %v751_v20, 4 }
 0x219   :  { %v482_v33 = vadd.f32 %v481_v30, %v480_v26  ;;  %v489_v34 = vmul.f32 0.125, %v468_v29  ;;  %v487_v35 = vrot.slane %v486_v32, 1  ;;  %v474_v36 = vadd.f32 %v473_v31, %v472_v27 }
 0x21b   :  { %v491_v37 = vmul.f32 0.125, %v482_v33  ;;  %v493_v38 = vmul.f32 %v489_v34, %v489_v34  ;;  %v488_v39 = vadd.f32 %v487_v35, %v486_v32  ;;  %v490_v40 = vmul.f32 0.125, %v474_v36 }
 0x21d   :  { %v495_v41 = vsub.f32 %v491_v37, %v493_v38  ;;  %v492_v42 = vmul.f32 0.125, %v488_v39  ;;  %v494_v43 = vmul.f32 %v490_v40, %v490_v40 }
 0x21f   :  { %v497_v44 = vmax.f32 %v495_v41, 0.0  ;;  %v496_v45 = vsub.f32 %v492_v42, %v494_v43 }
 0x221   :  { %v500_v46 = vadd.f32 1e-05, %v497_v44  ;;  %v498_v47 = vmax.f32 %v496_v45, 0.0 }
 0x223   :  { %v501_v48 = vadd.f32 1e-05, %v498_v47  ;;  %948 = vrsqrt.f32 %v500_v46 }
 0x225   :  { %950 = vrsqrt.f32 %v501_v48 }
 0x230   :  { %v949_v49 = vpop.eup %948 }
 0x232   :  { %v951_v50 = vpop.eup %950 }
 0x233   :  { %v506_v52 = vcombine.low %v949_v49, %v951_v50 }
 0x235   :  { %v513_v53 = vrot.slane %v506_v52, %v1087_v55 }
 0x237   :  { %v520_v56 = vrot.slane %v513_v53, %v1087_v55 }
 0x239   :  { %v522_v57 = vmul.f32 %v520_v56, %v499_v54 }
 0x23b   :  { %v528_v58 = vrot.slane %v522_v57, %v1094_v61  ;;  %v532_v59 = vrot.slane %v522_v57, %v1096_v62 }
 0x23d   :  { %v535_v60 = vmul.f32 %v528_v58, %v489_v34  ;;  %v536_v63 = vmul.f32 %v532_v59, %v490_v40  ;;  %v557_v5 = vmul.f32 %v532_v59, %v458_v12  ;;  %v556_v9 = vmul.f32 %v528_v58, %v456_v8 }
 0x23f   :  { %v539_v0 = vcombine.low %v535_v60, %v536_v63 }
 0x241   :  { %v546_v1 = vrot.slane %v539_v0, %v1087_v55 }
 0x243   :  { %v553_v3 = vrot.slane %v546_v1, %v1087_v55  ;;  %v829_v55 = vld [vmem:[%s1197_s7] ss:$0 sm:$0xff]  ;;  %s1005_s7 = smov [#allocation4]  }
 0x244   :  { %s778_s11 = sshll.u32 %s1005_s7, 4  ;;  %s779_s11 = int_to_ptr.vmem [resolvable:$true] %s778_s11 }
 0x245   :  { %v555_v4 = vsub.f32 %v523_v2, %v553_v3  ;;  %s978_s12 = scalar_lea.vmem %s779_s11, 128  ;;  %p983_p6 = scmp.lt.s32.totalorder %s779_s11, %s779_s11 }
 0x246   :  { %p979_p5 = scmp.ne.s32.totalorder %s779_s11, %s978_s12  ;;  %p984_p7 = scmp.lt.s32.totalorder %s978_s12, %s978_s12 }
 0x247   :  { %v566_v6 = vrot.slane %v555_v4, %v1096_v62  ;;  %v562_v11 = vrot.slane %v555_v4, %v1094_v61 }
 0x248   :  { %p985_p8 = por %p984_p7, %p983_p6 }
 0x249   :  { %v570_v13 = vadd.f32 %v566_v6, %v557_v5  ;;  %v569_v14 = vadd.f32 %v562_v11, %v556_v9 }
 0x24a   :  { %p986_p9 = pnand %p985_p8, %p979_p5 }
 0x24b   :  { %v572_v15 = vmax.f32 %v570_v13, 0.0  ;;  %v571_v16 = vmax.f32 %v569_v14, 0.0 }
 0x24d   :  { %v574_v17 = vpack.c.bf16 %v572_v15, %v572_v15  ;;  %v573_v18 = vpack.c.bf16 %v571_v16, %v571_v16 }
 0x24f   :  { %742 = vmatprep.mubr.bf16.mxu0 %v574_v17 }
 0x250   :  { %743 = vmatmul.mubr.bf16.vlgmr.msra.gmra.mxu0 %v573_v18 }
 0x310   :  { %v864_v19 = vpop.f32.mrf.mxu0 }
 0x312   :  { %v865_v12 = vpop.f32.mrf.mxu0 }
 0x313   :  { %v866_v62 = vadd.f32 %v865_v12, %v864_v19 }
 0x314   :  { %v867_v8 = vpop.f32.mrf.mxu0 }
 0x315   :  { %v745_v61 = vadd.f32 %v866_v62, %v829_v55 }
 0x316   :  { %v868_v21 = vpop.f32.mrf.mxu0 }
 0x317   :  { %v753_v7 = vsel %vm752_vm1, %v745_v61, -inf }
 0x318   :  { %v755_v10 = vsel %vm754_vm2, %v753_v7, -inf }
 0x319   :  { %756 = vmax.xlane.f32.xlu0 %v755_v10 }
 0x3a2   :  { %v757_v22 = vpop.xlane.xlu0 %756 }
 0x3a3   :  { %v758_v23 = vsub.f32 %v745_v61, %v757_v22 }
 0x3a5   :  { %v759_v51 = vsel %vm752_vm1, %v758_v23, -inf }
 0x3a6   :  { %v760_v24 = vmul.f32 1.442695, %v759_v51 }
 0x3a8   :  { %952 = vpow2.f32 %v760_v24 }
 0x3a9   :  { %954 = vtanh.f32 %v745_v61 }
 0x3b5   :  { %v953_v25 = vpop.eup %952 }
 0x3b6   :  { %v762_v26 = vsel %vm754_vm2, %v953_v25, 0.0  ;;  %v955_v28 = vpop.eup %954 }
 0x3b7   :  { %763 = vadd.xlane.f32.xlu0 %v762_v26  ;;  %v769_v32 = vmul.f32 0.5, %v955_v28 }
 0x440   :  { %v764_v27 = vpop.xlane.xlu0 %763 }
 0x441   :  { %956 = vrcp.f32 %v764_v27 }
 0x44e   :  { %v957_v29 = vpop.eup %956 }
 0x44f   :  { %v766_v30 = vmul.f32 %v957_v29, %v953_v25 }
 0x451   :  { %v846_v31 = vadd.f32 -0.5, %v766_v30 }
 0x453   :  { %v770_v33 = vsel %vm752_vm1, %v846_v31, %v769_v32 }
 0x454   :  { %771 = vst.msk [vmem:[#allocation4] sm:$0xff] %vm754_vm2, %v770_v33 }
 0x455   :  { %989 = shalt.err (!%p986_p9)
}
 0x456   :  { %781 = dma.vmem_to_hbm [thread:$0]  %s779_s11, 128, %s1199_s9, [#allocation5]  }
 0x457   :  { %1000 = dma.done.wait [#allocation5], 128  }
 0x458   :  { %1001 = vsyncadd [#allocation5], 4294967168 }
 0x459   :  { %785 = vsyncpa [#allocation5], 1 }
 0x45a   :  { %786 = vsyncmov [#allocation3] }
 0x45d   :  { %s787_s15 = vpop.sfrf %786 }
 0x45e   :  { %p847_p10 = scmp.ne.s32.totalorder %s787_s15, 0 }
 0x460   :  { %791 = shalt.err (%p847_p10)  }

</bundles_post_ra>
